<compile_context>
chip_gen: v7x
topology: tpu7x:2x2x1
jax: 0.10.0
libtpu: 0.0.40
codegen_flags: <defaults>
</compile_context>

<pallas_src>
import functools

import jax
import jax.numpy as jnp
from jax import lax
from jax.experimental import pallas as pl
from jax.experimental.pallas import tpu as pltpu

_MiB = 1024 * 1024

_ACTS = {
    "relu": lambda v: jnp.maximum(v, 0.0),
    "sigmoid": jax.nn.sigmoid,
    "exp": jnp.exp,
    "softplus": jax.nn.softplus,
    "tanh": jnp.tanh,
}
_TRANSC_PER_ELEM = {"relu": 0, "sigmoid": 1, "exp": 1, "softplus": 2, "tanh": 1}


def _round_up(x, m):
    return ((x + m - 1) // m) * m


def _vmem_budget_bytes():
    """Per-generation scoped-VMEM budget (v5e/v6e: 128 MiB physical, v7x: 64 MiB per TC)."""
    cap = None
    try:
        info = pltpu.get_tpu_info()
        cap = int(getattr(info, "vmem_capacity_bytes", 0)) or None
    except Exception:
        cap = None
    if cap is None:
        kind = ""
        try:
            kind = jax.devices()[0].device_kind.lower()
        except Exception:
            pass
        # v5*/v6* TensorCores have 128 MiB VMEM; be conservative otherwise (covers v7x).
        cap = 128 * _MiB if ("v5" in kind or "v6" in kind) else 64 * _MiB
    if cap <= 64 * _MiB:
        return 48 * _MiB                       # v7x: leave headroom for compiler scratch
    return min(cap - 24 * _MiB, 100 * _MiB)    # v5e/v6e: use most of the 128 MiB


def _matmul_vmem_bytes(tm, tk, tn, bn):
    f = 4
    x_b = 2 * tm * tk * f                      # double-buffered x tile
    w_b = 2 * tk * tn * f                      # double-buffered W tile
    bias_b = 0 if bn else 2 * tn * f           # bias row (dropped under BN)
    y_b = 2 * tm * tn * f                      # double-buffered output tile
    stats_b = 2 * 2 * tn * f if bn else 0      # sum + sum-of-squares rows
    acc_b = tm * tn * 4                        # f32 accumulator scratch
    return x_b + w_b + bias_b + y_b + stats_b + acc_b


def _select_tiles(B, K, N, bn, budget, caps):
    """Largest tiles under the VMEM budget; full-dim blocks (no padding) for small axes."""
    cap_m, cap_n, cap_k = caps

    def axis(dim, cap):
        if dim <= cap:
            return dim, dim                    # block == full array dim: no padding needed
        return cap, _round_up(dim, cap)

    while True:
        tm, b_pad = axis(B, cap_m)
        tn, n_pad = axis(N, cap_n)
        tk, k_pad = axis(K, cap_k)
        if _matmul_vmem_bytes(tm, tk, tn, bn) <= budget:
            break
        if cap_k > 256:
            cap_k //= 2
        elif cap_n > 128:
            cap_n //= 2
        elif cap_m > 64:
            cap_m //= 2
        else:
            break
    return tm, tn, tk, b_pad, n_pad, k_pad


# --------------------------------------------------------------------------------------
# Kernels
# --------------------------------------------------------------------------------------
def _fc_kernel(x_ref, w_ref, b_ref, o_ref, *scratch, activate, single_k, mxu_bf16):
    """Linear + bias + activation (no BN).  grid = (B tiles, N tiles, K tiles)."""
    a = x_ref[...]
    w = w_ref[...]
    if mxu_bf16:
        a = a.astype(jnp.bfloat16)
        w = w.astype(jnp.bfloat16)

    def epilogue(acc):
        y = acc + b_ref[...]                   # (1, tn) broadcasts over the batch tile
        o_ref[...] = _ACTS[activate](y).astype(o_ref.dtype)

    if single_k:
        # Single K step: compute directly, no scratch accumulator / zero-init / RMW.
        epilogue(jnp.dot(a, w, preferred_element_type=jnp.float32))
    else:
        acc_ref, = scratch
        k = pl.program_id(2)

        @pl.when(k == 0)
        def _():
            acc_ref[...] = jnp.zeros_like(acc_ref)

        acc_ref[...] += jnp.dot(a, w, preferred_element_type=jnp.float32)

        @pl.when(k == pl.num_programs(2) - 1)
        def _():
            epilogue(acc_ref[...])


def _bn_matmul_kernel(x_ref, w_ref, y_ref, sum_ref, sq_ref, *scratch,
                      single_k, mask_rows, b_real, mxu_bf16):
    """Pass 1 of BN path: linear output + per-column sum / sum-of-squares.
    grid = (N tiles, B tiles, K tiles); the (1, tn) stat rows stay resident (accumulate)
    across the B and K axes.  Bias is skipped (cancels under mean subtraction)."""
    b = pl.program_id(1)
    k = pl.program_id(2)

    @pl.when((b == 0) & (k == 0))
    def _():
        sum_ref[...] = jnp.zeros_like(sum_ref)
        sq_ref[...] = jnp.zeros_like(sq_ref)

    a = x_ref[...]
    w = w_ref[...]
    if mxu_bf16:
        a = a.astype(jnp.bfloat16)
        w = w.astype(jnp.bfloat16)

    def epilogue(y):
        if mask_rows:
            rows = lax.broadcasted_iota(jnp.int32, y.shape, 0) + b * y.shape[0]
            ym = y * (rows < b_real).astype(jnp.float32)
        else:
            ym = y
        sum_ref[...] += jnp.sum(ym, axis=0, keepdims=True)
        sq_ref[...] += jnp.sum(ym * ym, axis=0, keepdims=True)
        y_ref[...] = y.astype(y_ref.dtype)

    if single_k:
        epilogue(jnp.dot(a, w, preferred_element_type=jnp.float32))
    else:
        acc_ref, = scratch

        @pl.when(k == 0)
        def _():
            acc_ref[...] = jnp.zeros_like(acc_ref)

        acc_ref[...] += jnp.dot(a, w, preferred_element_type=jnp.float32)

        @pl.when(k == pl.num_programs(2) - 1)
        def _():
            epilogue(acc_ref[...])


def _bn_norm_kernel(y_ref, sum_ref, sq_ref, g_ref, be_ref, o_ref, *, activate, eps, b_real):
    """Pass 2 of BN path: normalize with biased batch stats, affine, activation."""
    inv_n = jnp.float32(1.0 / b_real)
    mean = sum_ref[...] * inv_n
    var = jnp.maximum(sq_ref[...] * inv_n - mean * mean, 0.0)
    scale = lax.rsqrt(var + jnp.float32(eps)) * g_ref[...]
    y = (y_ref[...] - mean) * scale + be_ref[...]
    o_ref[...] = _ACTS[activate](y).astype(o_ref.dtype)


# --------------------------------------------------------------------------------------
# Wrapper
# --------------------------------------------------------------------------------------
@functools.partial(jax.jit,
                   static_argnames=("activate", "bn", "eps", "mxu_bf16", "max_tiles"))
def fc_layer(x, weight_t, bias, gamma=None, beta=None, *, activate="relu", bn=False,
             eps=1e-5, mxu_bf16=False, max_tiles=(512, 512, 1024)):
    """Fused FC_Layer forward.

    x:        (B, in_features)  float32
    weight_t: (in_features, out_features)  (PyTorch weight, transposed)
    bias:     (out_features,)
    gamma, beta: (out_features,) BatchNorm1d affine params (required iff bn=True)
    """
    B, K = x.shape
    K2, N = weight_t.shape
    assert K == K2
    assert activate in _ACTS
    if bn:
        assert gamma is not None and beta is not None

    budget = _vmem_budget_bytes()
    tm, tn, tk, b_pad, n_pad, k_pad = _select_tiles(B, K, N, bn, budget, max_tiles)
    k_steps = k_pad // tk
    single_k = k_steps == 1
    grid_b, grid_n = b_pad // tm, n_pad // tn

    # Pad only if a dim is actually tiled (full-dim blocks above need no padding).
    xp = x if (b_pad == B and k_pad == K) else jnp.pad(x, ((0, b_pad - B), (0, k_pad - K)))
    wp = (weight_t if (k_pad == K and n_pad == N)
          else jnp.pad(weight_t, ((0, k_pad - K), (0, n_pad - N))))

    scratch = [] if single_k else [pltpu.VMEM((tm, tn), jnp.float32)]
    cost = pl.CostEstimate(
        flops=2 * B * K * N,
        transcendentals=_TRANSC_PER_ELEM[activate] * B * N,
        bytes_accessed=4 * (B * K + K * N + 3 * N + 2 * B * N),
    )

    if not bn:
        bp = (bias if n_pad == N else jnp.pad(bias, (0, n_pad - N))).reshape(1, n_pad)
        kernel = functools.partial(_fc_kernel, activate=activate, single_k=single_k,
                                   mxu_bf16=mxu_bf16)
        out_padded = pl.pallas_call(
            kernel,
            out_shape=jax.ShapeDtypeStruct((b_pad, n_pad), x.dtype),
            grid_spec=pltpu.PrefetchScalarGridSpec(
                num_scalar_prefetch=0,
                grid=(grid_b, grid_n, k_steps),
                in_specs=[
                    pl.BlockSpec((tm, tk), lambda i, j, k: (i, k)),
                    pl.BlockSpec((tk, tn), lambda i, j, k: (k, j)),
                    pl.BlockSpec((1, tn), lambda i, j, k: (0, j)),
                ],
                out_specs=pl.BlockSpec((tm, tn), lambda i, j, k: (i, j)),
                scratch_shapes=scratch,
            ),
            compiler_params=pltpu.CompilerParams(
                dimension_semantics=("parallel", "parallel", "arbitrary"),
                vmem_limit_bytes=int(budget)),
            cost_estimate=cost,
        )(xp, wp, bp)
        return out_padded[:B, :N]

    # ---------------- bn=True: two-pass, tiled batch statistics ----------------
    mask_rows = b_pad != B
    kernel1 = functools.partial(_bn_matmul_kernel, single_k=single_k,
                                mask_rows=mask_rows, b_real=B, mxu_bf16=mxu_bf16)
    y_lin, col_sum, col_sq = pl.pallas_call(
        kernel1,
        out_shape=(jax.ShapeDtypeStruct((b_pad, n_pad), jnp.float32),
                   jax.ShapeDtypeStruct((1, n_pad), jnp.float32),
                   jax.ShapeDtypeStruct((1, n_pad), jnp.float32)),
        grid_spec=pltpu.PrefetchScalarGridSpec(
            num_scalar_prefetch=0,
            grid=(grid_n, grid_b, k_steps),     # stats accumulate across B and K axes
            in_specs=[
                pl.BlockSpec((tm, tk), lambda n, b, k: (b, k)),
                pl.BlockSpec((tk, tn), lambda n, b, k: (k, n)),
            ],
            out_specs=[
                pl.BlockSpec((tm, tn), lambda n, b, k: (b, n)),
                pl.BlockSpec((1, tn), lambda n, b, k: (0, n)),
                pl.BlockSpec((1, tn), lambda n, b, k: (0, n)),
            ],
            scratch_shapes=scratch,
        ),
        compiler_params=pltpu.CompilerParams(
            dimension_semantics=("parallel", "arbitrary", "arbitrary"),
            vmem_limit_bytes=int(budget)),
        cost_estimate=cost,
    )(xp, wp)

    gp = (gamma if n_pad == N
          else jnp.pad(gamma, (0, n_pad - N), constant_values=1.0)).reshape(1, n_pad)
    bep = (beta if n_pad == N else jnp.pad(beta, (0, n_pad - N))).reshape(1, n_pad)
    kernel2 = functools.partial(_bn_norm_kernel, activate=activate, eps=eps, b_real=B)
    out_padded = pl.pallas_call(
        kernel2,
        out_shape=jax.ShapeDtypeStruct((b_pad, n_pad), x.dtype),
        grid_spec=pltpu.PrefetchScalarGridSpec(
            num_scalar_prefetch=0,
            grid=(grid_b, grid_n),
            in_specs=[
                pl.BlockSpec((tm, tn), lambda i, j: (i, j)),
                pl.BlockSpec((1, tn), lambda i, j: (0, j)),
                pl.BlockSpec((1, tn), lambda i, j: (0, j)),
                pl.BlockSpec((1, tn), lambda i, j: (0, j)),
                pl.BlockSpec((1, tn), lambda i, j: (0, j)),
            ],
            out_specs=pl.BlockSpec((tm, tn), lambda i, j: (i, j)),
        ),
        compiler_params=pltpu.CompilerParams(
            dimension_semantics=("parallel", "parallel"),
            vmem_limit_bytes=int(budget)),
    )(y_lin, col_sum, col_sq, gp, bep)
    return out_padded[:B, :N]


# TODO(synk): dropout (F.dropout, training=True) not implemented in-kernel; the module's
# default dropout=0.0 makes it a no-op for the reference forward.


def _ref_forward(x, weight, bias, gamma, beta, activate, bn, eps=1e-5):
    y = x @ weight.T + bias
    if bn:
        mu = y.mean(0, keepdims=True)
        var = ((y - mu) ** 2).mean(0, keepdims=True)
        y = (y - mu) / jnp.sqrt(var + eps) * gamma + beta
    return _ACTS[activate](y)


if __name__ == "__main__":
    key = jax.random.PRNGKey(0)

    def make_params(k, in_f, out_f):
        kw, kb = jax.random.split(k)
        bound = 1.0 / jnp.sqrt(jnp.float32(in_f))
        w = jax.random.uniform(kw, (out_f, in_f), minval=-bound, maxval=bound,
                               dtype=jnp.float32)
        b = jax.random.uniform(kb, (out_f,), minval=-bound, maxval=bound,
                               dtype=jnp.float32)
        return w, b

    # --- config 1: module defaults (small, pad-free full-dim tiles) --------------------
    k1, k2, k3, key = jax.random.split(key, 4)
    B1, IN1, OUT1 = 8, 32, 16
    w1, b1 = make_params(k1, IN1, OUT1)
    g1 = jnp.ones((OUT1,), jnp.float32)
    be1 = jnp.zeros((OUT1,), jnp.float32)
    x1 = jax.random.normal(k2, (B1, IN1), dtype=jnp.float32)

    out = jax.block_until_ready(fc_layer(x1, w1.T, b1, activate="relu", bn=False))
    ref = _ref_forward(x1, w1, b1, g1, be1, "relu", False)
    assert out.shape == (B1, OUT1)
    assert jnp.allclose(out, ref, atol=1e-4, rtol=1e-4)

    out_bn = jax.block_until_ready(
        fc_layer(x1, w1.T, b1, g1, be1, activate="tanh", bn=True))
    ref_bn = _ref_forward(x1, w1, b1, g1, be1, "tanh", True)
    assert jnp.allclose(out_bn, ref_bn, atol=1e-4, rtol=1e-4)

    # --- config 2: non-multiple-of-128 dims, still single full-dim tiles (no padding) ---
    k4, k5, key = jax.random.split(key, 3)
    B2, IN2, OUT2 = 16, 300, 272
    w2, b2 = make_params(k4, IN2, OUT2)
    g2 = jnp.ones((OUT2,), jnp.float32)
    be2 = jnp.zeros((OUT2,), jnp.float32)
    x2 = jax.random.normal(k5, (B2, IN2), dtype=jnp.float32)

    out2a = jax.block_until_ready(fc_layer(x2, w2.T, b2, activate="sigmoid", bn=False))
    ref2a = _ref_forward(x2, w2, b2, g2, be2, "sigmoid", False)
    assert jnp.allclose(out2a, ref2a, atol=1e-4, rtol=1e-4)

    out2b = jax.block_until_ready(
        fc_layer(x2, w2.T, b2, g2, be2, activate="softplus", bn=True))
    ref2b = _ref_forward(x2, w2, b2, g2, be2, "softplus", True)
    assert jnp.allclose(out2b, ref2b, atol=1e-4, rtol=1e-4)

    # --- config 3: force tiny tile caps to exercise multi-tile B/N/K, K-accumulation, ---
    # --- padded columns, and masked (tiled) BN batch statistics -------------------------
    k6, k7, key = jax.random.split(key, 3)
    B3, IN3, OUT3 = 20, 160, 272
    w3, b3 = make_params(k6, IN3, OUT3)
    g3 = 0.5 + jax.random.uniform(k7, (OUT3,), dtype=jnp.float32)
    be3 = jax.random.normal(key, (OUT3,), dtype=jnp.float32) * 0.1
    x3 = jax.random.normal(k7, (B3, IN3), dtype=jnp.float32)
    small_caps = (8, 128, 128)

    out3a = jax.block_until_ready(
        fc_layer(x3, w3.T, b3, activate="exp", bn=False, max_tiles=small_caps))
    ref3a = _ref_forward(x3, w3, b3, g3, be3, "exp", False)
    assert jnp.allclose(out3a, ref3a, atol=1e-4, rtol=1e-4)

    out3b = jax.block_until_ready(
        fc_layer(x3, w3.T, b3, g3, be3, activate="relu", bn=True, max_tiles=small_caps))
    ref3b = _ref_forward(x3, w3, b3, g3, be3, "relu", True)
    assert jnp.allclose(out3b, ref3b, atol=1e-4, rtol=1e-4)

    print("KERNEL_OK")
</pallas_src>

<mosaic_0001>
module attributes {stable_mosaic.version = 11 : i64} {
  func.func @_fc_kernel(%arg0: i32, %arg1: i32, %arg2: i32, %arg3: memref<8x32xf32, #tpu.memory_space<vmem>>, %arg4: memref<32x16xf32, #tpu.memory_space<vmem>>, %arg5: memref<1x16xf32, #tpu.memory_space<vmem>>, %arg6: memref<8x16xf32, #tpu.memory_space<vmem>>) attributes {dimension_semantics = [#tpu.dimension_semantics<parallel>, #tpu.dimension_semantics<parallel>, #tpu.dimension_semantics<arbitrary>], iteration_bounds = array<i64: 1, 1, 1>, scalar_prefetch = 0 : i64, scratch_operands = 0 : i64, tpu.core_type = #tpu.core_type<tc>, window_params = [{transform_indices = @transform_0, window_bounds = array<i64: 8, 32>}, {transform_indices = @transform_1, window_bounds = array<i64: 32, 16>}, {transform_indices = @transform_2, window_bounds = array<i64: 1, 16>}, {transform_indices = @transform_3, window_bounds = array<i64: 8, 16>}]} {
    %c0 = arith.constant 0 : index
    %c0_0 = arith.constant 0 : index
    %0 = vector.load %arg3[%c0, %c0_0] : memref<8x32xf32, #tpu.memory_space<vmem>>, vector<8x32xf32>
    %c0_1 = arith.constant 0 : index
    %c0_2 = arith.constant 0 : index
    %1 = vector.load %arg4[%c0_1, %c0_2] : memref<32x16xf32, #tpu.memory_space<vmem>>, vector<32x16xf32>
    %cst = arith.constant dense<0.000000e+00> : vector<8x16xf32>
    %2 = tpu.matmul %0, %1, %cst {dimension_numbers = #tpu.dot_dimension_numbers<[1], [0], [0], [1], [0, 0, 1, 1], [], []>} : vector<8x32xf32>, vector<32x16xf32>, vector<8x16xf32> -> vector<8x16xf32>
    %c0_3 = arith.constant 0 : index
    %c0_4 = arith.constant 0 : index
    %3 = vector.load %arg5[%c0_3, %c0_4] : memref<1x16xf32, #tpu.memory_space<vmem>>, vector<1x16xf32>
    %4 = vector.broadcast %3 : vector<1x16xf32> to vector<8x16xf32>
    %5 = arith.addf %2, %4 : vector<8x16xf32>
    %cst_5 = arith.constant 0.000000e+00 : f32
    %6 = vector.broadcast %cst_5 : f32 to vector<8x16xf32>
    %7 = arith.maximumf %5, %6 : vector<8x16xf32>
    %c0_6 = arith.constant 0 : index
    %c0_7 = arith.constant 0 : index
    %8 = vector.load %arg6[%c0_6, %c0_7] : memref<8x16xf32, #tpu.memory_space<vmem>>, vector<8x16xf32>
    tpu.vector_store %arg6[%c0_6, %c0_7], %7 {strides = array<i32>} : memref<8x16xf32, #tpu.memory_space<vmem>>, vector<8x16xf32>,
    return
  }
  func.func @transform_0(%arg0: i32, %arg1: i32, %arg2: i32) -> (i32, i32) {
    %c0_i32 = arith.constant 0 : i32
    return %arg0, %arg2 : i32, i32
  }
  func.func @transform_1(%arg0: i32, %arg1: i32, %arg2: i32) -> (i32, i32) {
    %c0_i32 = arith.constant 0 : i32
    return %arg2, %arg1 : i32, i32
  }
  func.func @transform_2(%arg0: i32, %arg1: i32, %arg2: i32) -> (i32, i32) {
    %c0_i32 = arith.constant 0 : i32
    %c0_i32_0 = arith.constant 0 : i32
    return %c0_i32, %arg1 : i32, i32
  }
  func.func @transform_3(%arg0: i32, %arg1: i32, %arg2: i32) -> (i32, i32) {
    %c0_i32 = arith.constant 0 : i32
    return %arg0, %arg1 : i32, i32
  }
}

</mosaic_0001>

<bundles_post_ra>
// kernel: fc_layer.1
= control target key start
LH: loop header
LB: loop body
LE: loop exit
PB: predicated region body
PF: predicated region fallthrough
CT: control target
= control target key end

     0   :  { %v170_v3 = vmov 0.0|0.0   ;;  %vm171_vm0 = vmmov 0   ;;  %v172_v6 = vmov 0.0   ;;  %s224_s0 = inlined_call_operand.vmem [shape: f32[8,32], index: 0, kind: input, shape index: {}]   ;;  %s225_s1 = inlined_call_operand.vmem [shape: f32[32,16], index: 1, kind: input, shape index: {}]   ;;  %s226_s2 = inlined_call_operand.vmem [shape: f32[1,16], index: 2, kind: input, shape index: {}]   ;;  %s227_s3 = inlined_call_operand.hbm [shape: f32[8,16], index: 3, kind: output, shape index: {}]  }
   0x1   :  { %v16_v0 = vld [vmem:[%s225_s1] sm:$0xff]  ;;  %v17_v1 = vld [vmem:[%s225_s1 + $0x8] sm:$0xff]  ;;  %v18_v2 = vld [vmem:[%s225_s1 + $0x10] sm:$0xff]  ;;  %136 = vmatprep.subr.bf16.mxu0 %v170_v3  ;;  %133 = vmatprep.mubr.msk.f32.mxu0 %vm171_vm0, %v172_v6 }
   0x2   :  { %v137_v4 = vpack.c.bf16 %v17_v1, %v16_v0  ;;  %v19_v5 = vld [vmem:[%s225_s1 + $0x18] sm:$0xff] }
   0x3   :  { %8 = vsyncpa [#allocation3], 0  ;;  %v140_v7 = vpack.c.bf16 %v19_v5, %v18_v2  ;;  %v15_v8 = vld [vmem:[%s224_s0] sm:$0xff]  ;;  %vm27_vm1 = vcmask 261120   ;;  %s173_s1 = smov [#allocation2]   ;;  %vm102_vm2 = vcmask 130048  }
   0x4   :  { %138 = vmatpush3.bf16.msra.mxu0 %v137_v4  ;;  %v118_v9 = vld [vmem:[%s226_s2] ss:$0 sm:$0xff]  ;;  %s110_s24 = sshll.u32 %s173_s1, 4  ;;  %s111_s24 = int_to_ptr.vmem [resolvable:$true] %s110_s24 }
   0x5   :  { %139 = vmatprep.subr.bf16.mxu0 %v170_v3  ;;  %s146_s25 = scalar_lea.vmem %s111_s24, 128  ;;  %p151_p1 = scmp.lt.s32.totalorder %s111_s24, %s111_s24 }
   0x6   :  { %p147_p0 = scmp.ne.s32.totalorder %s111_s24, %s146_s25  ;;  %p152_p2 = scmp.lt.s32.totalorder %s146_s25, %s146_s25 }
   0x8   :  { %141 = vmatpush3.bf16.msra.mxu0 %v140_v7  ;;  %p153_p3 = por %p152_p2, %p151_p1 }
   0xa   :  { %p154_p4 = pnand %p153_p3, %p147_p0 }
   0xb   :  { %134 = vmatmul.mubr.msk.f32.vlgmr.msra.gmra.mrb[0].mxu0 %vm27_vm1, %v15_v8 }
  0xde   :  { %v97_v10 = vpop.f32.mrb[0].mxu0 }
  0xdf   :  { %v98_v11 = vadd.f32 %v118_v9, %v97_v10  ;;  %v135_v12 = vpop.f32.mrb[1].mxu0 }
  0xe1   :  { %v101_v13 = vmax.f32 %v98_v11, 0.0 }
  0xe3   :  { %103 = vst.msk [vmem:[#allocation2] sm:$0xff] %vm102_vm2, %v101_v13 }
  0xe4   :  { %157 = shalt.err (!%p154_p4)
}
  0xe5   :  { %s158_s2 = scalar_lea.hbm %s227_s3, 128 }
  0xe6   :  { %p159_p5 = scmp.ne.s32.totalorder %s227_s3, %s158_s2  ;;  %p162_p6 = scmp.lt.u32.totalorder %s158_s2, %s227_s3 }
  0xe8   :  { %p164_p7 = pnand %p162_p6, %p159_p5 }
  0xea   :  { %167 = shalt.err (!%p164_p7)
}
  0xeb   :  { %113 = dma.vmem_to_hbm [thread:$0]  %s111_s24, 128, %s227_s3, [#allocation3]  }
  0xec   :  { %168 = dma.done.wait [#allocation3], 128  }
  0xed   :  { %169 = vsyncadd [#allocation3], 4294967168 }
  0xee   :  { %117 = vsyncpa [#allocation3], 1 }

</bundles_post_ra>
